<compile_context>
chip_gen: v7x
topology: tpu7x:2x2x1
jax: 0.10.0
libtpu: 0.0.40
codegen_flags: <defaults>
</compile_context>

<pallas_src>
import jax
import jax.numpy as jnp
from jax.experimental import pallas as pl
from jax.experimental.pallas import tpu as pltpu


def conv2x2_tanh_kernel(x_ref, wb_ref, o_ref):
    """x_ref : (N, H, W)    un-padded input in VMEM (loaded exactly once).
    wb_ref: (5,)          [w00, w01, w10, w11, bias] in SMEM.
    o_ref : (N, Ho, Wo)   output in VMEM, Ho = H + 1, Wo = W + 1."""
    N, H, W = x_ref.shape

    x = x_ref[...]                                        # single vector load

    # Build z: x placed in the top-left corner of an output-sized register
    # buffer, with a zero last row and zero last column.  z IS the (+1,+1)
    # window term (w11).  The zero row/column is exactly the conv padding
    # halo, so the other three window terms are plain wrap-around rolls of z:
    # whatever wraps in is always that zero halo -> no masks required.
    zero_col = jnp.zeros((N, H, 1), jnp.float32)
    zero_row = jnp.zeros((N, 1, W + 1), jnp.float32)
    z = jnp.concatenate([x, zero_col], axis=2)            # (N, H,  Wo)
    z = jnp.concatenate([z, zero_row], axis=1)            # (N, Ho, Wo)

    z_d = pltpu.roll(z, shift=1, axis=1)     # rows +1  -> x[i-1, j  ]  (w01)
    z_r = pltpu.roll(z, shift=1, axis=2)     # cols +1  -> x[i  , j-1]  (w10)
    z_dr = pltpu.roll(z_d, shift=1, axis=2)  # both +1  -> x[i-1, j-1]  (w00)

    acc = (wb_ref[0] * z_dr
           + wb_ref[1] * z_d
           + wb_ref[2] * z_r
           + wb_ref[3] * z
           + wb_ref[4])
    o_ref[...] = jnp.tanh(acc)               # EUP slot; single output store


def conv_tanh(x_nchw, weight, bias):
    """x_nchw: (N, 1, H, W) float32; weight: (1, 1, 2, 2); bias: (1,)."""
    N, C, H, W = x_nchw.shape
    assert C == 1
    # stride 1, padding 1, dilation 1, kernel 2 -> Ho = H + 1, Wo = W + 1
    Ho, Wo = H + 1, W + 1

    x = x_nchw.reshape(N, H, W).astype(jnp.float32)            # squeeze channel
    wb = jnp.concatenate(
        [weight.reshape(4), bias.reshape(1)]).astype(jnp.float32)   # (5,) SMEM

    out = pl.pallas_call(
        conv2x2_tanh_kernel,
        out_shape=jax.ShapeDtypeStruct((N, Ho, Wo), jnp.float32),
        in_specs=[
            pl.BlockSpec(memory_space=pltpu.MemorySpace.VMEM),   # x
            pl.BlockSpec(memory_space=pltpu.MemorySpace.SMEM),   # weights+bias
        ],
        out_specs=pl.BlockSpec(memory_space=pltpu.MemorySpace.VMEM),
    )(x, wb)

    return out.reshape(N, 1, Ho, Wo)


if __name__ == "__main__":
    key = jax.random.PRNGKey(0)
    kx, kw, kb = jax.random.split(key, 3)

    # Deterministic input matching torch.randn(4, 1, 8, 8)
    x = jax.random.normal(kx, (4, 1, 8, 8), dtype=jnp.float32)

    # Deterministic Conv2d(1, 1, (2, 2)) parameters (kaiming-uniform-like range).
    fan_in = 1 * 2 * 2
    bound = 1.0 / (fan_in ** 0.5)
    weight = jax.random.uniform(kw, (1, 1, 2, 2), jnp.float32, -bound, bound)
    bias = jax.random.uniform(kb, (1,), jnp.float32, -bound, bound)

    y = conv_tanh(x, weight, bias)
    jax.block_until_ready(y)

    # Cross-check against a pure-JAX reference (lax conv) for sanity.
    ref = jax.lax.conv_general_dilated(
        x, weight, window_strides=(1, 1), padding=((1, 1), (1, 1)),
        dimension_numbers=("NCHW", "OIHW", "NCHW"))
    ref = jnp.tanh(ref + bias.reshape(1, 1, 1, 1))
    assert y.shape == (4, 1, 9, 9)
    assert jnp.allclose(y, ref, atol=1e-5, rtol=1e-5)

    print("KERNEL_OK")
</pallas_src>

<mosaic_0001>
module attributes {stable_mosaic.version = 11 : i64} {
  func.func @conv2x2_tanh_kernel(%arg0: memref<4x8x8xf32, #tpu.memory_space<vmem>>, %arg1: memref<5xf32, #tpu.memory_space<smem>>, %arg2: memref<4x9x9xf32, #tpu.memory_space<vmem>>) attributes {dimension_semantics = [], scalar_prefetch = 0 : i64, scratch_operands = 0 : i64, tpu.core_type = #tpu.core_type<tc>} {
    %c0 = arith.constant 0 : index
    %c0_0 = arith.constant 0 : index
    %c0_1 = arith.constant 0 : index
    %0 = vector.load %arg0[%c0, %c0_0, %c0_1] : memref<4x8x8xf32, #tpu.memory_space<vmem>>, vector<4x8x8xf32>
    %cst = arith.constant 0.000000e+00 : f32
    %1 = vector.broadcast %cst : f32 to vector<4x8x1xf32>
    %cst_2 = arith.constant 0.000000e+00 : f32
    %2 = vector.broadcast %cst_2 : f32 to vector<4x1x9xf32>
    %3 = tpu.concatenate %0, %1 in 2 : vector<4x8x8xf32>, vector<4x8x1xf32> -> vector<4x8x9xf32>
    %4 = tpu.concatenate %3, %2 in 1 : vector<4x8x9xf32>, vector<4x1x9xf32> -> vector<4x9x9xf32>
    %c1_i32 = arith.constant 1 : i32
    %5 = tpu.dynamic_rotate %4 by %c1_i32 dim 1 : vector<4x9x9xf32>, i32 -> vector<4x9x9xf32>
    %c1_i32_3 = arith.constant 1 : i32
    %6 = tpu.dynamic_rotate %4 by %c1_i32_3 dim 2 : vector<4x9x9xf32>, i32 -> vector<4x9x9xf32>
    %c1_i32_4 = arith.constant 1 : i32
    %7 = tpu.dynamic_rotate %5 by %c1_i32_4 dim 2 : vector<4x9x9xf32>, i32 -> vector<4x9x9xf32>
    %c0_5 = arith.constant 0 : index
    %8 = memref.load %arg1[%c0_5] : memref<5xf32, #tpu.memory_space<smem>>
    %9 = vector.broadcast %8 : f32 to vector<4x9x9xf32>
    %10 = arith.mulf %9, %7 : vector<4x9x9xf32>
    %c1 = arith.constant 1 : index
    %11 = memref.load %arg1[%c1] : memref<5xf32, #tpu.memory_space<smem>>
    %12 = vector.broadcast %11 : f32 to vector<4x9x9xf32>
    %13 = arith.mulf %12, %5 : vector<4x9x9xf32>
    %14 = arith.addf %10, %13 : vector<4x9x9xf32>
    %c2 = arith.constant 2 : index
    %15 = memref.load %arg1[%c2] : memref<5xf32, #tpu.memory_space<smem>>
    %16 = vector.broadcast %15 : f32 to vector<4x9x9xf32>
    %17 = arith.mulf %16, %6 : vector<4x9x9xf32>
    %18 = arith.addf %14, %17 : vector<4x9x9xf32>
    %c3 = arith.constant 3 : index
    %19 = memref.load %arg1[%c3] : memref<5xf32, #tpu.memory_space<smem>>
    %20 = vector.broadcast %19 : f32 to vector<4x9x9xf32>
    %21 = arith.mulf %20, %4 : vector<4x9x9xf32>
    %22 = arith.addf %18, %21 : vector<4x9x9xf32>
    %c4 = arith.constant 4 : index
    %23 = memref.load %arg1[%c4] : memref<5xf32, #tpu.memory_space<smem>>
    %24 = vector.broadcast %23 : f32 to vector<4x9x9xf32>
    %25 = arith.addf %22, %24 : vector<4x9x9xf32>
    %26 = math.tanh %25 : vector<4x9x9xf32>
    %c0_6 = arith.constant 0 : index
    %c0_7 = arith.constant 0 : index
    %c0_8 = arith.constant 0 : index
    %27 = vector.load %arg2[%c0_6, %c0_7, %c0_8] : memref<4x9x9xf32, #tpu.memory_space<vmem>>, vector<4x9x9xf32>
    tpu.vector_store %arg2[%c0_6, %c0_7, %c0_8], %26 {strides = array<i32>} : memref<4x9x9xf32, #tpu.memory_space<vmem>>, vector<4x9x9xf32>,
    return
  }
}

</mosaic_0001>

<bundles_post_ra>
// kernel: tpu_custom_call.1
= control target key start
LH: loop header
LB: loop body
LE: loop exit
PB: predicated region body
PF: predicated region fallthrough
CT: control target
= control target key end

     0   :  { %7 = vsyncpa [#allocation3], 0  ;;  %s605_s0 = inlined_call_operand.hbm [shape: f32[4,8,8], index: 0, kind: input, shape index: {}]   ;;  %s606_s1 = inlined_call_operand.vmem [shape: f32[5], index: 1, kind: input, shape index: {}]   ;;  %s607_s2 = inlined_call_operand.vmem [shape: f32[4,9,9], index: 2, kind: output, shape index: {}]  }
   0x1   :  { %8 = vsyncpa [#allocation4], 0  ;;  %s384_s9 = smov [#allocation2]   ;;  %s27_s13 = sshll.u32 %s606_s1, 4  ;;  %s28_s13 = int_to_ptr.vmem [resolvable:$true] %s27_s13 }
   0x2   :  { %s14_s10 = sshll.u32 %s384_s9, 4  ;;  %s346_s16 = scalar_lea.hbm %s605_s0, 512  ;;  %s15_s10 = int_to_ptr.vmem [resolvable:$true] %s14_s10 }
   0x3   :  { %p347_p0 = scmp.ne.s32.totalorder %s605_s0, %s346_s16  ;;  %p350_p1 = scmp.lt.u32.totalorder %s346_s16, %s605_s0 }
   0x5   :  { %p352_p2 = pnand %p350_p1, %p347_p0 }
   0x7   :  { %355 = shalt.err (!%p352_p2)
}
   0x8   :  { %s356_s21 = scalar_lea.vmem %s15_s10, 512  ;;  %p361_p4 = scmp.lt.s32.totalorder %s15_s10, %s15_s10 }
   0x9   :  { %p357_p3 = scmp.ne.s32.totalorder %s15_s10, %s356_s21  ;;  %p362_p5 = scmp.lt.s32.totalorder %s356_s21, %s356_s21 }
   0xb   :  { %p363_p6 = por %p362_p5, %p361_p4 }
   0xd   :  { %p364_p7 = pnand %p363_p6, %p357_p3 }
   0xf   :  { %367 = shalt.err (!%p364_p7)
}
  0x10   :  { %s385_s1 = smov 128   ;;  %s386_s22 = smov 8  }
  0x11   :  { %20 = dma.hbm_to_vmem [thread:$0]  %s605_s0, 512, %s15_s10, [#allocation3], %s385_s1, %s385_s1, %s386_s22  }
  0x12   :  { %s368_s25 = scalar_lea.vmem %s28_s13, 16  ;;  %p373_p9 = scmp.lt.s32.totalorder %s28_s13, %s28_s13 }
  0x13   :  { %p369_p8 = scmp.ne.s32.totalorder %s28_s13, %s368_s25  ;;  %p374_p10 = scmp.lt.s32.totalorder %s368_s25, %s368_s25 }
  0x15   :  { %p375_p11 = por %p374_p10, %p373_p9 }
  0x17   :  { %p376_p12 = pnand %p375_p11, %p369_p8 }
  0x19   :  { %379 = shalt.err (!%p376_p12)
}
  0x1a   :  { %s387_s26 = smov [#allocation5]  }
  0x1b   :  { %30 = dma.vmem_to_smem %s28_s13, 16, %s387_s26, [#allocation4]  }
  0x1c   :  { %380 = dma.done.wait [#allocation3], 512  }
  0x1d   :  { %381 = vsyncadd [#allocation3], 4294966784 }
  0x1e   :  { %382 = dma.done.wait [#allocation4], 16  }
  0x1f   :  { %383 = vsyncadd [#allocation4], 4294967280 }
  0x20   :  { %37 = sfence }
  0x21   :  { %v39_v0 = vld [vmem:[#allocation2 + $0x8] sm:$0xff]  ;;  %vm42_vm0 = vcmask 64512   ;;  %v38_v1 = vld [vmem:[#allocation2] sm:$0xff]  ;;  %v40_v2 = vld [vmem:[#allocation2 + $0x10] sm:$0xff]  ;;  %vm47_vm1 = vcmask 1047553   ;;  %s388_s0 = smov 9  }
  0x22   :  { %v422_v3 = vsel %vm42_vm0, %v39_v0, 0.0  ;;  %v424_v4 = vsel %vm42_vm0, %v38_v1, 0.0  ;;  %v426_v5 = vsel %vm42_vm0, %v40_v2, 0.0  ;;  %v41_v6 = vld [vmem:[#allocation2 + $0x18] sm:$0xff]  ;;  %s319_s27 = sld [smem:[#allocation5 + $0x1]]  ;;  %v389_v24 = vmov 0.0  }
  0x23   :  { %v50_v7 = vrot.slane %v422_v3, 7  ;;  %v48_v8 = vrot.slane %v424_v4, 7  ;;  %v52_v9 = vrot.slane %v426_v5, 7  ;;  %v431_v10 = vsel %vm42_vm0, %v41_v6, 0.0  ;;  %s321_s28 = sld [smem:[#allocation5 + $0x3]]  ;;  %s320_s29 = sld [smem:[#allocation5 + $0x2]] }
  0x24   :  { %v54_v11 = vrot.slane %v431_v10, 7  ;;  %vm64_vm2 = vcmask 1047624   ;;  %s143_s30 = sld [smem:[#allocation5]]  ;;  %s322_s3 = sld [smem:[#allocation5 + $0x4]]  ;;  %vm303_vm3 = vcmask 72704   ;;  %vm305_vm4 = vcmask 65536  }
  0x25   :  { %v435_v12 = vsel %vm47_vm1, %v50_v7, 0.0  ;;  %v438_v13 = vsel %vm47_vm1, %v48_v8, 0.0  ;;  %v441_v14 = vsel %vm47_vm1, %v52_v9, 0.0  ;;  %s390_s4 = smov 120  }
  0x26   :  { %101 = vrot.lane.b32.xlu1 %v435_v12, %s388_s0  ;;  %95 = vrot.lane.b32.xlu0 %v438_v13, %s388_s0  ;;  %v57_v15 = vrot.slane %v435_v12, 7  ;;  %v58_v16 = vrot.slane %v441_v14, 7  ;;  %v56_v17 = vrot.slane %v438_v13, 7  ;;  %v454_v19 = vsel %vm47_vm1, %v54_v11, 0.0 }
  0x27   :  { %v59_v22 = vrot.slane %v454_v19, 7 }
  0x28   :  { %v451_v18 = vsel %vm47_vm1, %v57_v15, %v50_v7  ;;  %v461_v20 = vsel %vm47_vm1, %v58_v16, %v52_v9  ;;  %v464_v21 = vsel %vm47_vm1, %v56_v17, %v48_v8  ;;  %v154_v25 = vstv %s319_s27 }
  0x29   :  { %v472_v23 = vsel %vm47_vm1, %v59_v22, %v54_v11  ;;  %v156_v26 = vmul.f32 %v154_v25, %v464_v21  ;;  %v155_v27 = vmul.f32 %v154_v25, %v438_v13  ;;  %v158_v28 = vmul.f32 %v154_v25, %v451_v18 }
  0x2a   :  { %104 = vrot.lane.b32.xlu1 %v451_v18, %s388_s0  ;;  %107 = vrot.lane.b32.xlu0 %v441_v14, %s388_s0  ;;  %v157_v29 = vmul.f32 %v154_v25, %v435_v12  ;;  %v160_v30 = vmul.f32 %v154_v25, %v461_v20  ;;  %v159_v31 = vmul.f32 %v154_v25, %v441_v14  ;;  %v219_v34 = vstv %s321_s28 }
  0x2b   :  { %v162_v32 = vmul.f32 %v154_v25, %v472_v23  ;;  %v161_v33 = vmul.f32 %v154_v25, %v454_v19  ;;  %v220_v35 = vmul.f32 %v219_v34, %v424_v4  ;;  %v222_v61 = vmul.f32 %v219_v34, %v422_v3 }
  0x2c   :  { %v221_v63 = vmul.f32 0.0, %v219_v34  ;;  %v224_v0 = vmul.f32 %v219_v34, %v431_v10  ;;  %v223_v1 = vmul.f32 %v219_v34, %v426_v5 }
  0x2e   :  { %110 = vrot.lane.b32.xlu1 %v461_v20, %s388_s0  ;;  %98 = vrot.lane.b32.xlu0 %v464_v21, %s388_s0 }
  0x32   :  { %116 = vrot.lane.b32.xlu1 %v472_v23, %s388_s0  ;;  %113 = vrot.lane.b32.xlu0 %v454_v19, %s388_s0 }
  0x36   :  { %68 = vrot.lane.b32.xlu1 %v389_v24, %s388_s0  ;;  %65 = vrot.lane.b32.xlu0 %v424_v4, %s388_s0 }
  0x3a   :  { %74 = vrot.lane.b32.xlu1 %v426_v5, %s388_s0  ;;  %71 = vrot.lane.b32.xlu0 %v422_v3, %s388_s0 }
  0x3e   :  { %77 = vrot.lane.b32.xlu0 %v431_v10, %s388_s0  ;;  %173 = vrot.lane.b32.xlu1 %v156_v26, %s386_s22 }
  0x42   :  { %171 = vrot.lane.b32.xlu0 %v155_v27, %s386_s22  ;;  %177 = vrot.lane.b32.xlu1 %v158_v28, %s386_s22 }
  0x46   :  { %175 = vrot.lane.b32.xlu0 %v157_v29, %s386_s22  ;;  %181 = vrot.lane.b32.xlu1 %v160_v30, %s386_s22 }
  0x4a   :  { %179 = vrot.lane.b32.xlu0 %v159_v31, %s386_s22  ;;  %185 = vrot.lane.b32.xlu1 %v162_v32, %s386_s22  ;;  %v204_v31 = vstv %s320_s29 }
  0x4e   :  { %183 = vrot.lane.b32.xlu0 %v161_v33, %s386_s22  ;;  %v144_v33 = vstv %s143_s30 }
  0x52   :  { %230 = vrot.lane.b32.xlu0 %v220_v35, %s386_s22 }
  0x98   :  { %v102_v36 = vpop.permute.xlu1 %101  ;;  %v96_v37 = vpop.permute.xlu0 %95 }
  0x99   :  { %v97_v56 = vsel %vm64_vm2, %v96_v37, %v438_v13  ;;  %v103_v58 = vsel %vm64_vm2, %v102_v36, %v435_v12 }
  0x9c   :  { %v105_v38 = vpop.permute.xlu1 %104  ;;  %v108_v39 = vpop.permute.xlu0 %107 }
  0x9d   :  { %v106_v55 = vsel %vm64_vm2, %v105_v38, %v451_v18  ;;  %v109_v60 = vsel %vm64_vm2, %v108_v39, %v441_v14 }
  0xa0   :  { %v111_v40 = vpop.permute.xlu1 %110  ;;  %v99_v41 = vpop.permute.xlu0 %98 }
  0xa1   :  { %v100_v53 = vsel %vm64_vm2, %v99_v41, %v464_v21  ;;  %v112_v57 = vsel %vm64_vm2, %v111_v40, %v461_v20 }
  0xa4   :  { %v117_v42 = vpop.permute.xlu1 %116  ;;  %v114_v43 = vpop.permute.xlu0 %113 }
  0xa5   :  { %v118_v59 = vsel %vm64_vm2, %v117_v42, %v472_v23  ;;  %v115_v62 = vsel %vm64_vm2, %v114_v43, %v454_v19 }
  0xa8   :  { %v69_v44 = vpop.permute.xlu1 %68  ;;  %v66_v45 = vpop.permute.xlu0 %65 }
  0xa9   :  { %v70_v46 = vsel %vm64_vm2, %v69_v44, 0.0  ;;  %v67_v47 = vsel %vm64_vm2, %v66_v45, %v424_v4 }
  0xaa   :  { %82 = vrot.lane.b32.xlu0 %v70_v46, %s388_s0  ;;  %80 = vrot.lane.b32.xlu1 %v67_v47, %s388_s0  ;;  %v254_v46 = vstv %s322_s3 }
  0xac   :  { %v75_v48 = vpop.permute.xlu1 %74  ;;  %v72_v49 = vpop.permute.xlu0 %71 }
  0xad   :  { %v76_v50 = vsel %vm64_vm2, %v75_v48, %v426_v5  ;;  %v73_v51 = vsel %vm64_vm2, %v72_v49, %v422_v3 }
  0xae   :  { %86 = vrot.lane.b32.xlu0 %v76_v50, %s388_s0  ;;  %84 = vrot.lane.b32.xlu1 %v73_v51, %s388_s0 }
  0xb0   :  { %v78_v52 = vpop.permute.xlu0 %77  ;;  %v174_v7 = vpop.permute.xlu1 %173 }
  0xb1   :  { %v79_v54 = vsel %vm64_vm2, %v78_v52, %v431_v10 }
  0xb2   :  { %121 = vrot.lane.b32.xlu0 %v100_v53, %s388_s0  ;;  %88 = vrot.lane.b32.xlu1 %v79_v54, %s388_s0 }
  0xb4   :  { %v172_v2 = vpop.permute.xlu0 %171  ;;  %v178_v9 = vpop.permute.xlu1 %177 }
  0xb6   :  { %125 = vrot.lane.b32.xlu0 %v106_v55, %s388_s0  ;;  %119 = vrot.lane.b32.xlu1 %v97_v56, %s388_s0 }
  0xb8   :  { %v176_v6 = vpop.permute.xlu0 %175  ;;  %v182_v15 = vpop.permute.xlu1 %181 }
  0xba   :  { %129 = vrot.lane.b32.xlu0 %v112_v57, %s388_s0  ;;  %123 = vrot.lane.b32.xlu1 %v103_v58, %s388_s0 }
  0xbc   :  { %v550_v8 = vpop.permute.xlu0 %179  ;;  %v186_v17 = vpop.permute.xlu1 %185 }
  0xbe   :  { %133 = vrot.lane.b32.xlu0 %v118_v59, %s388_s0  ;;  %127 = vrot.lane.b32.xlu1 %v109_v60, %s388_s0 }
  0xc0   :  { %v552_v11 = vpop.permute.xlu0 %183 }
  0xc2   :  { %234 = vrot.lane.b32.xlu0 %v222_v61, %s386_s22  ;;  %131 = vrot.lane.b32.xlu1 %v115_v62, %s388_s0 }
  0xc4   :  { %v231_v16 = vpop.permute.xlu0 %230 }
  0xc6   :  { %232 = vrot.lane.b32.xlu1 %v221_v63, %s386_s22  ;;  %238 = vrot.lane.b32.xlu0 %v224_v0, %s386_s22 }
  0xca   :  { %236 = vrot.lane.b32.xlu1 %v223_v1, %s386_s22 }
 0x11c   :  { %v83_v22 = vpop.permute.xlu0 %82  ;;  %v81_v24 = vpop.permute.xlu1 %80 }
 0x11d   :  { %v90_v32 = vsel %vm64_vm2, %v81_v24, %v424_v4  ;;  %v91_v50 = vsel %vm64_vm2, %v83_v22, 0.0 }
 0x11e   :  { %v205_v37 = vmul.f32 %v204_v31, %v90_v32  ;;  %v206_v58 = vmul.f32 %v204_v31, %v91_v50 }
 0x120   :  { %v87_v25 = vpop.permute.xlu0 %86  ;;  %v85_v26 = vpop.permute.xlu1 %84 }
 0x121   :  { %v92_v4 = vsel %vm64_vm2, %v85_v26, %v422_v3 }
 0x122   :  { %v207_v51 = vmul.f32 %v204_v31, %v92_v4 }
 0x124   :  { %v122_v27 = vpop.permute.xlu0 %121  ;;  %v89_v28 = vpop.permute.xlu1 %88 }
 0x125   :  { %v136_v36 = vsel %vm64_vm2, %v122_v27, %v464_v21  ;;  %v94_v61 = vsel %vm64_vm2, %v89_v28, %v431_v10 }
 0x126   :  { %v146_v43 = vmul.f32 %v144_v33, %v136_v36 }
 0x128   :  { %v126_v29 = vpop.permute.xlu0 %125  ;;  %v120_v30 = vpop.permute.xlu1 %119  ;;  %v196_v52 = vadd.f32 %v174_v7, %v146_v43 }
 0x129   :  { %v135_v34 = vsel %vm64_vm2, %v120_v30, %v438_v13  ;;  %v138_v38 = vsel %vm64_vm2, %v126_v29, %v451_v18 }
 0x12a   :  { %v145_v35 = vmul.f32 %v144_v33, %v135_v34  ;;  %v148_v45 = vmul.f32 %v144_v33, %v138_v38  ;;  %v211_v63 = vadd.f32 %v206_v58, %v196_v52 }
 0x12c   :  { %v195_v39 = vadd.f32 %v172_v2, %v145_v35  ;;  %v130_v40 = vpop.permute.xlu0 %129  ;;  %v124_v41 = vpop.permute.xlu1 %123  ;;  %v198_v54 = vadd.f32 %v178_v9, %v148_v45  ;;  %v209_v9 = vmul.f32 %v204_v31, %v94_v61 }
 0x12d   :  { %v137_v42 = vsel %vm64_vm2, %v124_v41, %v435_v12  ;;  %v140_v21 = vsel %vm64_vm2, %v130_v40, %v461_v20 }
 0x12e   :  { %v210_v44 = vadd.f32 %v205_v37, %v195_v39  ;;  %v147_v13 = vmul.f32 %v144_v33, %v137_v42  ;;  %v150_v55 = vmul.f32 %v144_v33, %v140_v21  ;;  %v213_v1 = vadd.f32 %v206_v58, %v198_v54 }
 0x130   :  { %v245_v47 = vadd.f32 %v231_v16, %v210_v44  ;;  %v134_v48 = vpop.permute.xlu0 %133  ;;  %v128_v18 = vpop.permute.xlu1 %127  ;;  %v197_v49 = vadd.f32 %v176_v6, %v147_v13  ;;  %v200_v2 = vadd.f32 %v182_v15, %v150_v55 }
 0x131   :  { %v142_v12 = vsel %vm64_vm2, %v134_v48, %v472_v23  ;;  %v139_v3 = vsel %vm64_vm2, %v128_v18, %v441_v14  ;;  %v93_v14 = vsel %vm64_vm2, %v87_v25, %v426_v5 }
 0x132   :  { %v255_v53 = vadd.f32 %v254_v46, %v245_v47  ;;  %v149_v56 = vmul.f32 %v144_v33, %v139_v3  ;;  %v212_v57 = vadd.f32 %v207_v51, %v197_v49  ;;  %v152_v20 = vmul.f32 %v144_v33, %v142_v12 }
 0x133   :  { %v208_v10 = vmul.f32 %v204_v31, %v93_v14  ;;  %v215_v28 = vadd.f32 %v206_v58, %v200_v2 }
 0x134   :  { %330 = vtanh.f32 %v255_v53  ;;  %v235_v59 = vpop.permute.xlu0 %234  ;;  %v132_v60 = vpop.permute.xlu1 %131  ;;  %v199_v7 = vadd.f32 %v550_v8, %v149_v56  ;;  %v202_v16 = vadd.f32 %v186_v17, %v152_v20 }
 0x135   :  { %v247_v62 = vadd.f32 %v235_v59, %v212_v57  ;;  %v141_v23 = vsel %vm64_vm2, %v132_v60, %v454_v19 }
 0x136   :  { %v151_v0 = vmul.f32 %v144_v33, %v141_v23  ;;  %v214_v25 = vadd.f32 %v208_v10, %v199_v7  ;;  %v217_v30 = vadd.f32 %v206_v58, %v202_v16 }
 0x137   :  { %v257_v6 = vadd.f32 %v254_v46, %v247_v62 }
 0x138   :  { %v233_v22 = vpop.permute.xlu1 %232  ;;  %v201_v24 = vadd.f32 %v552_v11, %v151_v0  ;;  %v239_v5 = vpop.permute.xlu0 %238 }
 0x139   :  { %332 = vtanh.f32 %v257_v6  ;;  %v246_v26 = vadd.f32 %v233_v22, %v211_v63  ;;  %v248_v27 = vadd.f32 %v233_v22, %v213_v1  ;;  %v250_v15 = vadd.f32 %v233_v22, %v215_v28 }
 0x13a   :  { %v216_v19 = vadd.f32 %v209_v9, %v201_v24  ;;  %v252_v11 = vadd.f32 %v233_v22, %v217_v30 }
 0x13b   :  { %v256_v29 = vadd.f32 %v254_v46, %v246_v26  ;;  %v258_v33 = vadd.f32 %v254_v46, %v248_v27  ;;  %v260_v31 = vadd.f32 %v254_v46, %v250_v15 }
 0x13c   :  { %v237_v32 = vpop.permute.xlu1 %236  ;;  %v251_v17 = vadd.f32 %v239_v5, %v216_v19  ;;  %v262_v38 = vadd.f32 %v254_v46, %v252_v11 }
 0x13d   :  { %334 = vtanh.f32 %v256_v29  ;;  %v249_v8 = vadd.f32 %v237_v32, %v214_v25 }
 0x13e   :  { %v331_v34 = vpop.eup %330  ;;  %336 = vtanh.f32 %v258_v33  ;;  %v261_v36 = vadd.f32 %v254_v46, %v251_v17 }
 0x13f   :  { %v259_v35 = vadd.f32 %v254_v46, %v249_v8  ;;  %279 = vrot.lane.b32.xlu1 %v331_v34, %s390_s4 }
 0x141   :  { %338 = vtanh.f32 %v259_v35 }
 0x142   :  { %340 = vtanh.f32 %v260_v31 }
 0x143   :  { %v333_v37 = vpop.eup %332  ;;  %342 = vtanh.f32 %v261_v36 }
 0x144   :  { %283 = vrot.lane.b32.xlu1 %v333_v37, %s390_s4  ;;  %344 = vtanh.f32 %v262_v38 }
 0x147   :  { %v335_v39 = vpop.eup %334 }
 0x148   :  { %281 = vrot.lane.b32.xlu0 %v335_v39, %s390_s4  ;;  %v337_v40 = vpop.eup %336 }
 0x14b   :  { %v339_v41 = vpop.eup %338 }
 0x14c   :  { %285 = vrot.lane.b32.xlu0 %v337_v40, %s390_s4  ;;  %287 = vrot.lane.b32.xlu1 %v339_v41, %s390_s4  ;;  %v341_v42 = vpop.eup %340 }
 0x14d   :  { %v343_v4 = vpop.eup %342 }
 0x14e   :  { %v345_v43 = vpop.eup %344 }
 0x150   :  { %289 = vrot.lane.b32.xlu0 %v341_v42, %s390_s4  ;;  %291 = vrot.lane.b32.xlu1 %v343_v4, %s390_s4 }
 0x154   :  { %293 = vrot.lane.b32.xlu0 %v345_v43, %s390_s4 }
 0x1b1   :  { %v280_v44 = vpop.permute.xlu1 %279 }
 0x1b2   :  { %304 = vst.msk [vmem:[%s607_s2] sm:$0xff] %vm303_vm3, %v280_v44 }
 0x1b6   :  { %v284_v13 = vpop.permute.xlu1 %283 }
 0x1b7   :  { %307 = vst.msk [vmem:[%s607_s2 + $0x10] sm:$0xff] %vm303_vm3, %v284_v13 }
 0x1ba   :  { %v282_v45 = vpop.permute.xlu0 %281 }
 0x1bb   :  { %306 = vst.msk [vmem:[%s607_s2 + $0x8] sm:$0x1] %vm305_vm4, %v282_v45 }
 0x1be   :  { %v286_v46 = vpop.permute.xlu0 %285  ;;  %v288_v47 = vpop.permute.xlu1 %287 }
 0x1bf   :  { %308 = vst.msk [vmem:[%s607_s2 + $0x18] sm:$0x1] %vm305_vm4, %v286_v46 }
 0x1c0   :  { %309 = vst.msk [vmem:[%s607_s2 + $0x20] sm:$0xff] %vm303_vm3, %v288_v47 }
 0x1c2   :  { %v290_v21 = vpop.permute.xlu0 %289  ;;  %v292_v48 = vpop.permute.xlu1 %291 }
 0x1c3   :  { %310 = vst.msk [vmem:[%s607_s2 + $0x28] sm:$0x1] %vm305_vm4, %v290_v21 }
 0x1c4   :  { %311 = vst.msk [vmem:[%s607_s2 + $0x30] sm:$0xff] %vm303_vm3, %v292_v48 }
 0x1c6   :  { %v294_v18 = vpop.permute.xlu0 %293 }
 0x1c7   :  { %312 = vst.msk [vmem:[%s607_s2 + $0x38] sm:$0x1] %vm305_vm4, %v294_v18 }
 0x1c8   :  { %317 = vsyncpa [#allocation3], 1 }
 0x1c9   :  { %318 = vsyncpa [#allocation4], 1 }

</bundles_post_ra>
